<compile_context>
chip_gen: v6e
topology: v6e:2x2x1
jax: 0.10.0
libtpu: 0.0.40
codegen_flags: <defaults>
</compile_context>

<pallas_src>
import jax
import jax.numpy as jnp
from jax.experimental import pallas as pl
from jax.experimental.pallas import tpu as pltpu


def discriminator_kernel(x_ref, w1_ref, b1_ref, w2_ref, b2_ref, o_ref):
    # Hidden layer: bf16 MXU matmul, f32 accumulation; bias + ReLU in f32.
    h = jnp.dot(x_ref[...], w1_ref[...], preferred_element_type=jnp.float32)
    h = jnp.maximum(h + b1_ref[...], 0.0)                       # (tm, H)

    # Output projection H -> 1 as VPU multiply + XLU lane reduction instead of
    # an MXU matmul with output width 1 (which would waste the MXU).
    logit = jnp.sum(h * w2_ref[...], axis=-1, keepdims=True)    # (tm, 1)
    logit = logit + b2_ref[0]                                   # scalar bias from SMEM

    o_ref[...] = jax.nn.sigmoid(logit).astype(o_ref.dtype)


def _round_up(n, m):
    return ((n + m - 1) // m) * m


def discriminator_forward(x, w1, b1, w2, b2):
    """x: (B, D_in) f32 -> (B, 1) f32, matching torch Discriminator.forward."""
    B, D_in = x.shape
    H = w1.shape[1]
    assert w1.shape == (D_in, H)
    assert b1.shape == (1, H)
    assert w2.shape == (H, 1)
    assert b2.shape == (1, 1)

    # Lane-align the contraction dim (zero padding leaves x @ w1 unchanged)
    # and pick a batch tile: MXU-height 256 for big batches, else round B up
    # to a sublane multiple so the whole problem is one grid step.
    D_pad = _round_up(D_in, 128)
    tm = 256 if B >= 256 else _round_up(max(B, 8), 8)
    B_pad = _round_up(B, tm)

    if D_pad != D_in:
        x = jnp.pad(x, ((0, 0), (0, D_pad - D_in)))
        w1 = jnp.pad(w1, ((0, D_pad - D_in), (0, 0)))
    if B_pad != B:
        x = jnp.pad(x, ((0, B_pad - B), (0, 0)))

    # bf16 matmul operands: halves the w1/x DMA bytes and uses the MXU's
    # native bf16 path; accumulation and the epilogue remain f32.
    x_bf = x.astype(jnp.bfloat16)
    w1_bf = w1.astype(jnp.bfloat16)
    w2_row = w2.reshape(1, H).astype(jnp.float32)   # (1, H) row for VPU/XLU projection
    b2_smem = b2.reshape(1).astype(jnp.float32)     # 1-D scalar for SMEM

    grid = (B_pad // tm,)
    out = pl.pallas_call(
        discriminator_kernel,
        out_shape=jax.ShapeDtypeStruct((B_pad, 1), jnp.float32),
        grid=grid,
        in_specs=[
            pl.BlockSpec((tm, D_pad), lambda i: (i, 0)),     # x rows (pipelined)
            pl.BlockSpec((D_pad, H), lambda i: (0, 0)),      # w1, VMEM-resident
            pl.BlockSpec((1, H), lambda i: (0, 0)),          # b1, VMEM-resident
            pl.BlockSpec((1, H), lambda i: (0, 0)),          # w2 row, VMEM-resident
            pl.BlockSpec(memory_space=pltpu.MemorySpace.SMEM),  # b2 scalar
        ],
        out_specs=pl.BlockSpec((tm, 1), lambda i: (i, 0)),
        compiler_params=pltpu.CompilerParams(
            dimension_semantics=("parallel",)),
    )(x_bf, w1_bf, b1, w2_row, b2_smem)

    return out[:B]


def init_params(key, input_size, hidden_size):
    """Deterministic init mimicking nn.Linear's uniform(-1/sqrt(fan_in), +)."""
    k1, k2, k3, k4 = jax.random.split(key, 4)
    lim1 = 1.0 / jnp.sqrt(input_size)
    lim2 = 1.0 / jnp.sqrt(hidden_size)
    w1 = jax.random.uniform(k1, (input_size, hidden_size), jnp.float32, -lim1, lim1)
    b1 = jax.random.uniform(k2, (1, hidden_size), jnp.float32, -lim1, lim1)
    w2 = jax.random.uniform(k3, (hidden_size, 1), jnp.float32, -lim2, lim2)
    b2 = jax.random.uniform(k4, (1, 1), jnp.float32, -lim2, lim2)
    return w1, b1, w2, b2


if __name__ == "__main__":
    # Module's actual config (input_size = 28*28 = 784, hidden_size = 128)
    # with a small batch.  784 exercises the D_in -> 896 lane-padding path.
    batch = 8
    input_size = 28 * 28
    hidden_size = 128

    key = jax.random.PRNGKey(0)
    kx, kp = jax.random.split(key)
    x = jax.random.normal(kx, (batch, input_size), jnp.float32)
    w1, b1, w2, b2 = init_params(kp, input_size, hidden_size)

    out = discriminator_forward(x, w1, b1, w2, b2)
    out = jax.block_until_ready(out)

    # Pure-JAX f32 reference; tolerance loosened for the bf16 matmul operands
    # (f32 accumulation keeps the error small, sigmoid compresses it further).
    ref = jax.nn.sigmoid(jnp.maximum(x @ w1 + b1, 0.0) @ w2 + b2)
    assert out.shape == (batch, 1)
    assert jnp.allclose(out, ref, atol=2e-2, rtol=1e-3), "mismatch vs reference"

    print("KERNEL_OK")
</pallas_src>

<mosaic_0001>
module attributes {stable_mosaic.version = 11 : i64} {
  func.func @discriminator_kernel(%arg0: i32, %arg1: memref<8x896xbf16, #tpu.memory_space<vmem>>, %arg2: memref<896x128xbf16, #tpu.memory_space<vmem>>, %arg3: memref<1x128xf32, #tpu.memory_space<vmem>>, %arg4: memref<1x128xf32, #tpu.memory_space<vmem>>, %arg5: memref<1xf32, #tpu.memory_space<smem>>, %arg6: memref<8x1xf32, #tpu.memory_space<vmem>>) attributes {dimension_semantics = [#tpu.dimension_semantics<parallel>], iteration_bounds = array<i64: 1>, scalar_prefetch = 0 : i64, scratch_operands = 0 : i64, tpu.core_type = #tpu.core_type<tc>, window_params = [{transform_indices = @transform_0, window_bounds = array<i64: 8, 896>}, {pipeline_mode = #tpu.pipeline_mode<synchronous>, transform_indices = @transform_1, window_bounds = array<i64: 896, 128>}, {pipeline_mode = #tpu.pipeline_mode<synchronous>, transform_indices = @transform_2, window_bounds = array<i64: 1, 128>}, {pipeline_mode = #tpu.pipeline_mode<synchronous>, transform_indices = @transform_3, window_bounds = array<i64: 1, 128>}, {transform_indices = @transform_4, window_bounds = array<i64: 1>}, {transform_indices = @transform_5, window_bounds = array<i64: 8, 1>}]} {
    %c0 = arith.constant 0 : index
    %c0_0 = arith.constant 0 : index
    %0 = vector.load %arg1[%c0, %c0_0] : memref<8x896xbf16, #tpu.memory_space<vmem>>, vector<8x896xbf16>
    %c0_1 = arith.constant 0 : index
    %c0_2 = arith.constant 0 : index
    %1 = vector.load %arg2[%c0_1, %c0_2] : memref<896x128xbf16, #tpu.memory_space<vmem>>, vector<896x128xbf16>
    %cst = arith.constant dense<0.000000e+00> : vector<8x128xf32>
    %2 = tpu.matmul %0, %1, %cst {dimension_numbers = #tpu.dot_dimension_numbers<[1], [0], [0], [1], [0, 0, 1, 1], [], []>} : vector<8x896xbf16>, vector<896x128xbf16>, vector<8x128xf32> -> vector<8x128xf32>
    %c0_3 = arith.constant 0 : index
    %c0_4 = arith.constant 0 : index
    %3 = vector.load %arg3[%c0_3, %c0_4] : memref<1x128xf32, #tpu.memory_space<vmem>>, vector<1x128xf32>
    %4 = vector.broadcast %3 : vector<1x128xf32> to vector<8x128xf32>
    %5 = arith.addf %2, %4 : vector<8x128xf32>
    %cst_5 = arith.constant 0.000000e+00 : f32
    %6 = vector.broadcast %cst_5 : f32 to vector<8x128xf32>
    %7 = arith.maximumf %5, %6 : vector<8x128xf32>
    %c0_6 = arith.constant 0 : index
    %c0_7 = arith.constant 0 : index
    %8 = vector.load %arg4[%c0_6, %c0_7] : memref<1x128xf32, #tpu.memory_space<vmem>>, vector<1x128xf32>
    %9 = vector.broadcast %8 : vector<1x128xf32> to vector<8x128xf32>
    %10 = arith.mulf %7, %9 : vector<8x128xf32>
    %cst_8 = arith.constant dense<0.000000e+00> : vector<8xf32>
    %11 = vector.multi_reduction <add>, %10, %cst_8 [1] : vector<8x128xf32> to vector<8xf32>
    %12 = vector.shape_cast %11 : vector<8xf32> to vector<8x1xf32>
    %c0_9 = arith.constant 0 : index
    %13 = memref.load %arg5[%c0_9] : memref<1xf32, #tpu.memory_space<smem>>
    %14 = vector.broadcast %13 : f32 to vector<8x1xf32>
    %15 = arith.addf %12, %14 : vector<8x1xf32>
    %16 = arith.negf %15 : vector<8x1xf32>
    %17 = math.exp %16 : vector<8x1xf32>
    %cst_10 = arith.constant 1.000000e+00 : f32
    %18 = vector.broadcast %cst_10 : f32 to vector<8x1xf32>
    %19 = arith.addf %18, %17 : vector<8x1xf32>
    %20 = arith.divf %18, %19 : vector<8x1xf32>
    %c0_11 = arith.constant 0 : index
    %c0_12 = arith.constant 0 : index
    %21 = vector.load %arg6[%c0_11, %c0_12] : memref<8x1xf32, #tpu.memory_space<vmem>>, vector<8x1xf32>
    tpu.vector_store %arg6[%c0_11, %c0_12], %20 {strides = array<i32>} : memref<8x1xf32, #tpu.memory_space<vmem>>, vector<8x1xf32>,
    return
  }
  func.func @transform_0(%arg0: i32) -> (i32, i32) {
    %c0_i32 = arith.constant 0 : i32
    %c0_i32_0 = arith.constant 0 : i32
    return %arg0, %c0_i32 : i32, i32
  }
  func.func @transform_1(%arg0: i32) -> (i32, i32) {
    %c0_i32 = arith.constant 0 : i32
    %c0_i32_0 = arith.constant 0 : i32
    %c0_i32_1 = arith.constant 0 : i32
    return %c0_i32, %c0_i32_0 : i32, i32
  }
  func.func @transform_2(%arg0: i32) -> (i32, i32) {
    %c0_i32 = arith.constant 0 : i32
    %c0_i32_0 = arith.constant 0 : i32
    %c0_i32_1 = arith.constant 0 : i32
    return %c0_i32, %c0_i32_0 : i32, i32
  }
  func.func @transform_3(%arg0: i32) -> (i32, i32) {
    %c0_i32 = arith.constant 0 : i32
    %c0_i32_0 = arith.constant 0 : i32
    %c0_i32_1 = arith.constant 0 : i32
    return %c0_i32, %c0_i32_0 : i32, i32
  }
  func.func @transform_4(%arg0: i32) -> i32 {
    %c0_i32 = arith.constant 0 : i32
    %c0_i32_0 = arith.constant 0 : i32
    return %c0_i32 : i32
  }
  func.func @transform_5(%arg0: i32) -> (i32, i32) {
    %c0_i32 = arith.constant 0 : i32
    %c0_i32_0 = arith.constant 0 : i32
    return %arg0, %c0_i32 : i32, i32
  }
}

</mosaic_0001>

<bundles_post_ra>
// kernel: tpu_custom_call.1
= control target key start
LH: loop header
LB: loop body
LE: loop exit
PB: predicated region body
PF: predicated region fallthrough
CT: control target
= control target key end

     0   :  { %11 = vsyncpa [#allocation4], 0  ;;  %s1052_s0 = inlined_call_operand.hbm [shape: bf16[8,896], index: 0, kind: input, shape index: {}]   ;;  %s1053_s1 = inlined_call_operand.hbm [shape: bf16[896,128], index: 1, kind: input, shape index: {}]   ;;  %s1054_s2 = inlined_call_operand.vmem [shape: f32[1,128], index: 2, kind: input, shape index: {}]   ;;  %s1055_s3 = inlined_call_operand.vmem [shape: f32[1,128], index: 3, kind: input, shape index: {}]   ;;  %s1056_s4 = inlined_call_operand.<no memory space> [shape: f32[1], index: 4, kind: input, shape index: {}]   ;;  %s1057_s5 = inlined_call_operand.vmem [shape: f32[8,1], index: 5, kind: output, shape index: {}]  }
   0x1   :  { %12 = vsyncpa [#allocation6], 0  ;;  %s998_s18 = smov [#allocation3]   ;;  %s999_s20 = smov [#allocation5]  }
   0x2   :  { %s19_s19 = sshll.u32 %s998_s18, 4  ;;  %s28_s21 = sshll.u32 %s999_s20, 4  ;;  %s20_s19 = int_to_ptr.vmem [resolvable:$true] %s19_s19  ;;  %s29_s21 = int_to_ptr.vmem [resolvable:$true] %s28_s21 }
   0x3   :  { %s962_s22 = scalar_lea.vmem %s20_s19, 448  ;;  %p967_p1 = scmp.lt.s32.totalorder %s20_s19, %s20_s19 }
   0x4   :  { %p963_p0 = scmp.ne.s32.totalorder %s20_s19, %s962_s22  ;;  %p968_p2 = scmp.lt.s32.totalorder %s962_s22, %s962_s22 }
   0x6   :  { %p969_p3 = por %p968_p2, %p967_p1 }
   0x8   :  { %p970_p4 = pnand %p969_p3, %p963_p0 }
   0xa   :  { %973 = shalt.err (!%p970_p4)
}
   0xb   :  { %22 = dma.hbm_to_vmem [thread:$0]  %s1052_s0, 448, %s20_s19, [#allocation4]  }
   0xc   :  { %s982_s25 = scalar_lea.vmem %s29_s21, 7168  ;;  %p987_p6 = scmp.lt.s32.totalorder %s29_s21, %s29_s21 }
   0xd   :  { %p983_p5 = scmp.ne.s32.totalorder %s29_s21, %s982_s25  ;;  %p988_p7 = scmp.lt.s32.totalorder %s982_s25, %s982_s25 }
   0xf   :  { %p989_p8 = por %p988_p7, %p987_p6 }
  0x11   :  { %p990_p9 = pnand %p989_p8, %p983_p5 }
  0x13   :  { %993 = shalt.err (!%p990_p9)
}
  0x14   :  { %s1000_s26 = smov 64   ;;  %s1001_s27 = smov 4  }
  0x15   :  { %34 = dma.hbm_to_vmem [thread:$0]  %s1053_s1, 7168, %s29_s21, [#allocation6], %s1000_s26, %s1000_s26, %s1001_s27  }
  0x16   :  { %994 = dma.done.wait [#allocation4], 448  }
  0x17   :  { %995 = vsyncadd [#allocation4], 4294966848 }
  0x18   :  { %996 = dma.done.wait [#allocation6], 7168  }
  0x19   :  { %997 = vsyncadd [#allocation6], 4294960128  ;;  %v887_v0 = vld [vmem:[#allocation5 + $0x78] sm:$0xff]   ;;  %v891_v4 = vld [vmem:[#allocation5 + $0x70] sm:$0xff]   ;;  %v1002_v39 = vmov 0.0   ;;  %vm1003_vm0 = vmmov 0  }
  0x1a   :  { %v888_v1 = vld [vmem:[#allocation5 + $0xf8] sm:$0xff]   ;;  %786 = vmatprep.subr.bf16.mxu0 %v887_v0  ;;  %v892_v5 = vld [vmem:[#allocation5 + $0xf0] sm:$0xff]   ;;  %v895_v8 = vld [vmem:[#allocation5 + $0x68] sm:$0xff]   ;;  %vm712_vm1 = vcmask 7168  }
  0x1b   :  { %v889_v2 = vld [vmem:[#allocation5 + $0x38] sm:$0xff]   ;;  %808 = vmatprep.subr.bf16.mxu1 %v888_v1  ;;  %v893_v6 = vld [vmem:[#allocation5 + $0x30] sm:$0xff]   ;;  %v896_v9 = vld [vmem:[#allocation5 + $0xe8] sm:$0xff]  }
  0x1c   :  { %v890_v3 = vld [vmem:[#allocation5 + $0xb8] sm:$0xff]   ;;  %787 = vmatpush3.bf16.msra.mxu0 %v889_v2  ;;  %v894_v7 = vld [vmem:[#allocation5 + $0xb0] sm:$0xff]   ;;  %v897_v10 = vld [vmem:[#allocation5 + $0x28] sm:$0xff]  }
  0x1d   :  { %809 = vmatpush3.bf16.msra.mxu1 %v890_v3  ;;  %788 = vmatprep.subr.bf16.mxu0 %v891_v4  ;;  %v898_v11 = vld [vmem:[#allocation5 + $0xa8] sm:$0xff]   ;;  %v899_v12 = vld [vmem:[#allocation5 + $0x60] sm:$0xff]   ;;  %v903_v16 = vld [vmem:[#allocation5 + $0x58] sm:$0xff]  }
  0x1e   :  { %810 = vmatprep.subr.bf16.mxu1 %v892_v5  ;;  %v900_v13 = vld [vmem:[#allocation5 + $0xe0] sm:$0xff]   ;;  %v904_v17 = vld [vmem:[#allocation5 + $0xd8] sm:$0xff]   ;;  %v907_v20 = vld [vmem:[#allocation5 + $0x50] sm:$0xff]  }
  0x1f   :  { %v901_v14 = vld [vmem:[#allocation5 + $0x20] sm:$0xff]   ;;  %v905_v18 = vld [vmem:[#allocation5 + $0x18] sm:$0xff]   ;;  %v908_v21 = vld [vmem:[#allocation5 + $0xd0] sm:$0xff]  }
  0x20   :  { %789 = vmatpush3.bf16.msra.mxu0 %v893_v6  ;;  %v902_v15 = vld [vmem:[#allocation5 + $0xa0] sm:$0xff]   ;;  %v906_v19 = vld [vmem:[#allocation5 + $0x98] sm:$0xff]   ;;  %v909_v22 = vld [vmem:[#allocation5 + $0x10] sm:$0xff]  }
  0x21   :  { %811 = vmatpush3.bf16.msra.mxu1 %v894_v7  ;;  %790 = vmatprep.subr.bf16.mxu0 %v895_v8  ;;  %v910_v23 = vld [vmem:[#allocation5 + $0x90] sm:$0xff]   ;;  %v911_v24 = vld [vmem:[#allocation5 + $0x48] sm:$0xff]   ;;  %v915_v28 = vld [vmem:[#allocation5 + $0x40] sm:$0xff]  }
  0x22   :  { %812 = vmatprep.subr.bf16.mxu1 %v896_v9  ;;  %v912_v25 = vld [vmem:[#allocation5 + $0xc8] sm:$0xff]   ;;  %v916_v29 = vld [vmem:[#allocation5 + $0xc0] sm:$0xff]   ;;  %v923_v38 = vld [vmem:[#allocation5 + $0x178] sm:$0xff]  }
  0x23   :  { %v913_v26 = vld [vmem:[#allocation5 + $0x8] sm:$0xff]   ;;  %v917_v30 = vld [vmem:[#allocation5] sm:$0xff]   ;;  %v924_v40 = vld [vmem:[#allocation5 + $0x138] sm:$0xff]  }
  0x24   :  { %791 = vmatpush3.bf16.msra.mxu0 %v897_v10  ;;  %v914_v27 = vld [vmem:[#allocation5 + $0x88] sm:$0xff]   ;;  %v918_v31 = vld [vmem:[#allocation5 + $0x80] sm:$0xff]   ;;  %v925_v41 = vld [vmem:[#allocation5 + $0x1b8] sm:$0xff]  }
  0x25   :  { %813 = vmatpush3.bf16.msra.mxu1 %v898_v11  ;;  %792 = vmatprep.subr.bf16.mxu0 %v899_v12  ;;  %v48_v32 = vld [vmem:[#allocation3] sm:$0xff]  ;;  %v49_v33 = vld [vmem:[#allocation3 + $0x8] sm:$0xff]  ;;  %v935_v51 = vld [vmem:[#allocation5 + $0x158] sm:$0xff]  }
  0x26   :  { %814 = vmatprep.subr.bf16.mxu1 %v900_v13  ;;  %v721_v34 = vcombine.low %v48_v32, %v48_v32  ;;  %v722_v35 = vcombine.high %v48_v32, %v48_v32  ;;  %v723_v36 = vcombine.low %v49_v33, %v49_v33  ;;  %v724_v37 = vcombine.high %v49_v33, %v49_v33  ;;  %v926_v42 = vld [vmem:[#allocation5 + $0x170] sm:$0xff]   ;;  %v929_v45 = vld [vmem:[#allocation5 + $0x168] sm:$0xff]   ;;  %v932_v48 = vld [vmem:[#allocation5 + $0x160] sm:$0xff]  }
  0x27   :  { %v927_v43 = vld [vmem:[#allocation5 + $0x130] sm:$0xff]   ;;  %v930_v46 = vld [vmem:[#allocation5 + $0x128] sm:$0xff]   ;;  %v933_v49 = vld [vmem:[#allocation5 + $0x120] sm:$0xff]  }
  0x28   :  { %793 = vmatpush3.bf16.msra.mxu0 %v901_v14  ;;  %564 = vmatprep.mubr.bf16.mxu0 %v722_v35  ;;  %v928_v44 = vld [vmem:[#allocation5 + $0x1b0] sm:$0xff]   ;;  %v931_v47 = vld [vmem:[#allocation5 + $0x1a8] sm:$0xff]   ;;  %v934_v50 = vld [vmem:[#allocation5 + $0x1a0] sm:$0xff]  }
  0x29   :  { %815 = vmatpush3.bf16.msra.mxu1 %v902_v15  ;;  %794 = vmatprep.subr.bf16.mxu0 %v903_v16  ;;  %v936_v52 = vld [vmem:[#allocation5 + $0x118] sm:$0xff]   ;;  %v938_v54 = vld [vmem:[#allocation5 + $0x150] sm:$0xff]   ;;  %v941_v57 = vld [vmem:[#allocation5 + $0x148] sm:$0xff]  }
  0x2a   :  { %816 = vmatprep.subr.bf16.mxu1 %v904_v17  ;;  %604 = vmatprep.mubr.bf16.mxu1 %v724_v37  ;;  %v937_v53 = vld [vmem:[#allocation5 + $0x198] sm:$0xff]   ;;  %v939_v55 = vld [vmem:[#allocation5 + $0x110] sm:$0xff]   ;;  %v942_v59 = vld [vmem:[#allocation5 + $0x108] sm:$0xff]  }
  0x2b   :  { %v940_v56 = vld [vmem:[#allocation5 + $0x190] sm:$0xff]   ;;  %v943_v61 = vld [vmem:[#allocation5 + $0x188] sm:$0xff]   ;;  %v944_v62 = vld [vmem:[#allocation5 + $0x140] sm:$0xff]  }
  0x2c   :  { %795 = vmatpush3.bf16.msra.mxu0 %v905_v18  ;;  %v50_v58 = vld [vmem:[#allocation3 + $0x10] sm:$0xff]  ;;  %v945_v63 = vld [vmem:[#allocation5 + $0x100] sm:$0xff]   ;;  %v949_v2 = vld [vmem:[#allocation3 + $0x18] ss:$0 sps:$4 sm:$0xff]  }
  0x2d   :  { %817 = vmatpush3.bf16.msra.mxu1 %v906_v19  ;;  %796 = vmatprep.subr.bf16.mxu0 %v907_v20  ;;  %v726_v60 = vcombine.high %v50_v58, %v50_v58  ;;  %v946_v0 = vld [vmem:[#allocation5 + $0x180] sm:$0xff]   ;;  %v725_v1 = vcombine.low %v50_v58, %v50_v58 }
  0x2e   :  { %818 = vmatprep.subr.bf16.mxu1 %v908_v21  ;;  %v720_v12 = vld [vmem:[%s1054_s2] ss:$0 sm:$0xff] }
  0x30   :  { %797 = vmatpush3.bf16.msra.mxu0 %v909_v22 }
  0x31   :  { %819 = vmatpush3.bf16.msra.mxu1 %v910_v23  ;;  %798 = vmatprep.subr.bf16.mxu0 %v911_v24 }
  0x32   :  { %820 = vmatprep.subr.bf16.mxu1 %v912_v25 }
  0x34   :  { %799 = vmatpush3.bf16.msra.mxu0 %v913_v26 }
  0x35   :  { %821 = vmatpush3.bf16.msra.mxu1 %v914_v27  ;;  %800 = vmatprep.subr.bf16.mxu0 %v915_v28  ;;  %v784_v27 = vld [vmem:[%s1055_s3] ss:$0 sm:$0xff] }
  0x36   :  { %822 = vmatprep.subr.bf16.mxu1 %v916_v29 }
  0x38   :  { %801 = vmatpush3.bf16.msra.mxu0 %v917_v30  ;;  %v704_v30 = vstv %s1056_s4 }
  0x39   :  { %823 = vmatpush3.bf16.msra.mxu1 %v918_v31  ;;  %830 = vmatprep.subr.bf16.mxu0 %v923_v38 }
  0x3a   :  { %861 = vmatprep.subr.bf16.mxu1 %v1002_v39 }
  0x3b   :  { %565 = vmatmul.mubr.bf16.vlgmr.msra.gmra.mxu0 %v721_v34 }
  0x3c   :  { %605 = vmatmul.mubr.bf16.vlgmr.msra.gmra.mxu1 %v723_v36  ;;  %831 = vmatpush3.bf16.msra.mxu0 %v924_v40 }
  0x3d   :  { %862 = vmatpush3.bf16.msra.mxu1 %v925_v41  ;;  %832 = vmatprep.subr.bf16.mxu0 %v926_v42 }
  0x3e   :  { %863 = vmatprep.subr.bf16.mxu1 %v1002_v39  ;;  %877 = vmatprep.mubr.msk.bf16.mxu1 %vm1003_vm0, %v1002_v39 }
  0x3f   :  { %644 = vmatprep.mubr.bf16.mxu0 %v726_v60 }
  0x40   :  { %833 = vmatpush3.bf16.msra.mxu0 %v927_v43 }
  0x41   :  { %864 = vmatpush3.bf16.msra.mxu1 %v928_v44  ;;  %834 = vmatprep.subr.bf16.mxu0 %v929_v45 }
  0x42   :  { %865 = vmatprep.subr.bf16.mxu1 %v1002_v39 }
  0x44   :  { %835 = vmatpush3.bf16.msra.mxu0 %v930_v46 }
  0x45   :  { %866 = vmatpush3.bf16.msra.mxu1 %v931_v47  ;;  %836 = vmatprep.subr.bf16.mxu0 %v932_v48 }
  0x46   :  { %867 = vmatprep.subr.bf16.mxu1 %v1002_v39 }
  0x48   :  { %837 = vmatpush3.bf16.msra.mxu0 %v933_v49 }
  0x49   :  { %868 = vmatpush3.bf16.msra.mxu1 %v934_v50  ;;  %838 = vmatprep.subr.bf16.mxu0 %v935_v51 }
  0x4a   :  { %869 = vmatprep.subr.bf16.mxu1 %v1002_v39 }
  0x4c   :  { %839 = vmatpush3.bf16.msra.mxu0 %v936_v52 }
  0x4d   :  { %870 = vmatpush3.bf16.msra.mxu1 %v937_v53  ;;  %840 = vmatprep.subr.bf16.mxu0 %v938_v54 }
  0x4e   :  { %871 = vmatprep.subr.bf16.mxu1 %v1002_v39 }
  0x50   :  { %841 = vmatpush3.bf16.msra.mxu0 %v939_v55 }
  0x51   :  { %872 = vmatpush3.bf16.msra.mxu1 %v940_v56  ;;  %842 = vmatprep.subr.bf16.mxu0 %v941_v57 }
  0x52   :  { %873 = vmatprep.subr.bf16.mxu1 %v1002_v39 }
  0x54   :  { %843 = vmatpush3.bf16.msra.mxu0 %v942_v59 }
  0x55   :  { %874 = vmatpush3.bf16.msra.mxu1 %v943_v61  ;;  %844 = vmatprep.subr.bf16.mxu0 %v944_v62 }
  0x56   :  { %875 = vmatprep.subr.bf16.mxu1 %v1002_v39 }
  0x58   :  { %845 = vmatpush3.bf16.msra.mxu0 %v945_v63 }
  0x59   :  { %876 = vmatpush3.bf16.msra.mxu1 %v946_v0 }
  0x5b   :  { %645 = vmatmul.mubr.bf16.vlgmr.msra.gmra.mxu0 %v725_v1 }
  0x5c   :  { %878 = vmatmul.mubr.bf16.vlgmr.msra.gmra.mxu1 %v949_v2 }
  0xfb   :  { %v802_v3 = vpop.f32.mrf.mxu0 }
  0xfc   :  { %v824_v4 = vpop.f32.mrf.mxu1 }
  0xfd   :  { %v803_v5 = vpop.f32.mrf.mxu0 }
  0xfe   :  { %v825_v6 = vpop.f32.mrf.mxu1  ;;  %v804_v11 = vadd.f32 %v803_v5, %v802_v3 }
  0xff   :  { %v805_v7 = vpop.f32.mrf.mxu0  ;;  %v826_v14 = vadd.f32 %v825_v6, %v824_v4 }
 0x100   :  { %v827_v8 = vpop.f32.mrf.mxu1  ;;  %v567_v13 = vadd.f32 %v804_v11, %v720_v12 }
 0x101   :  { %v806_v9 = vpop.f32.mrf.mxu0 }
 0x102   :  { %v828_v10 = vpop.f32.mrf.mxu1  ;;  %v607_v18 = vadd.f32 %v826_v14, %v567_v13 }
 0x11b   :  { %v846_v15 = vpop.f32.mrf.mxu0 }
 0x11c   :  { %v686_v16 = vpop.f32.mrf.mxu1 }
 0x11d   :  { %v847_v17 = vpop.f32.mrf.mxu0 }
 0x11e   :  { %v848_v19 = vadd.f32 %v847_v17, %v846_v15  ;;  %v879_v20 = vpop.f32.mrf.mxu1 }
 0x11f   :  { %v849_v21 = vpop.f32.mrf.mxu0 }
 0x120   :  { %v647_v22 = vadd.f32 %v848_v19, %v607_v18  ;;  %v689_v23 = vpop.f32.mrf.mxu1 }
 0x121   :  { %v850_v24 = vpop.f32.mrf.mxu0 }
 0x122   :  { %v880_v25 = vpop.f32.mrf.mxu1  ;;  %v687_v26 = vadd.f32 %v686_v16, %v647_v22 }
 0x124   :  { %v692_v28 = vmax.f32 %v687_v26, 0.0 }
 0x126   :  { %v700_v29 = vmul.f32 %v784_v27, %v692_v28 }
 0x128   :  { %701 = vadd.xlane.f32.xlu0 %v700_v29 }
 0x1b1   :  { %v702_v31 = vpop.xlane.xlu0 %701 }
 0x1b2   :  { %v705_v32 = vadd.f32 %v704_v30, %v702_v31 }
 0x1b4   :  { %v785_v33 = vmul.f32 -1.442695, %v705_v32 }
 0x1b6   :  { %950 = vpow2.f32 %v785_v33 }
 0x1c3   :  { %v951_v34 = vpop.eup %950 }
 0x1c4   :  { %v709_v35 = vadd.f32 1.0, %v951_v34 }
 0x1c6   :  { %952 = vrcp.f32 %v709_v35 }
 0x1d3   :  { %v953_v36 = vpop.eup %952 }
 0x1d4   :  { %713 = vst.msk [vmem:[%s1057_s5] sm:$0xff] %vm712_vm1, %v953_v36 }
 0x1d5   :  { %718 = vsyncpa [#allocation4], 1 }
 0x1d6   :  { %719 = vsyncpa [#allocation6], 1 }

</bundles_post_ra>
